<compile_context>
chip_gen: v7x
topology: tpu7x:2x2x1
jax: 0.10.0
libtpu: 0.0.40
codegen_flags: <defaults>
</compile_context>

<pallas_src>
import functools

import jax
import jax.numpy as jnp
from jax.experimental import pallas as pl
from jax.experimental.pallas import tpu as pltpu


# ----------------------------------------------------------------------------- helpers
def _round_up(v, m):
    return (v + m - 1) // m * m


# ----------------------------------------------------------------------------- kernel
def _duration_predictor_kernel(x_ref, m_ref, w1_ref, b1_ref, g1_ref, be1_ref,
                               w2_ref, b2_ref, g2_ref, be2_ref, wp_ref, bp_ref,
                               o_ref, *, kernel_size, n_channels, eps):
    """Fully fused DurationPredictor forward for one batch element.

    x_ref : (1, Tp0, Cin_p)  masked/haloed input         m_ref : (1, Tp0, 1) mask
    w1_ref: (K*Cin_p, Cf_p)  packed conv_1 weight        b1/g1/be1: (1, Cf_p)
    w2_ref: (K*Cf_p,  Cf_p)  packed conv_2 weight        b2/g2/be2: (1, Cf_p)
    wp_ref: (1, Cf_p) proj weight row,  bp_ref: (1, 1) proj bias
    o_ref : (1, Tp2, 1)  where Tp2 = Tp0 - 4*(K//2)
    """
    K = kernel_size
    P = K // 2
    tp0 = x_ref.shape[1]
    tp1 = tp0 - 2 * P
    tp2 = tp1 - 2 * P
    cf_p = w1_ref.shape[1]
    inv_n = 1.0 / float(n_channels)

    x = x_ref[0]                       # (tp0, cin_p)
    m = m_ref[0]                       # (tp0, 1)

    # channel-validity mask: LayerNorm statistics only over the real filter_channels
    ch_mask = (jax.lax.broadcasted_iota(jnp.int32, (1, cf_p), 1) < n_channels
               ).astype(jnp.float32)

    def conv_valid(u, w_ref_, b_ref_, t_out):
        # 'same' conv on a zero-haloed input fused into ONE MXU matmul:
        # im2col (t_out, K*C) from K time-shifted slices -> contraction depth K*C.
        taps = [u[k:k + t_out, :] for k in range(K)]
        col = jnp.concatenate(taps, axis=-1) if K > 1 else taps[0]
        return jnp.dot(col, w_ref_[...], preferred_element_type=jnp.float32) + b_ref_[...]

    def layer_norm(h, g_ref_, be_ref_):
        mean = jnp.sum(h, axis=-1, keepdims=True) * inv_n
        d = (h - mean) * ch_mask                      # padded lanes stay exactly 0
        var = jnp.sum(d * d, axis=-1, keepdims=True) * inv_n
        return d * jax.lax.rsqrt(var + eps) * g_ref_[...] + be_ref_[...]

    u0 = x * m
    h1 = jnp.maximum(conv_valid(u0, w1_ref, b1_ref, tp1), 0.0)     # conv_1 + relu
    h1 = layer_norm(h1, g1_ref, be1_ref)                           # norm_1
    # TODO(synk): dropout is identity at inference; train-mode masking (pltpu PRNG) not implemented.
    u1 = h1 * m[P:P + tp1, :]
    h2 = jnp.maximum(conv_valid(u1, w2_ref, b2_ref, tp2), 0.0)     # conv_2 + relu
    h2 = layer_norm(h2, g2_ref, be2_ref)                           # norm_2
    u2 = h2 * m[2 * P:2 * P + tp2, :]
    # proj: Conv1d(filter_channels, 1, 1) as a lane reduction (avoids a 1-lane MXU
    # matmul and a lane-sparse store path).
    y = jnp.sum(u2 * wp_ref[...], axis=-1, keepdims=True) + bp_ref[...]
    o_ref[0] = y * m[2 * P:2 * P + tp2, :]


# ----------------------------------------------------------------------------- prepack
def prepack_params(params, kernel_size, in_channels, filter_channels):
    """PyTorch-layout params -> MXU-ready packed/padded tiles (run once, outside jit)."""
    K = kernel_size
    cin_p = _round_up(in_channels, 128)
    cf_p = _round_up(filter_channels, 128)

    def pack_conv(w, cin, cinp):
        # torch Conv1d weight (Cout, Cin, K) -> (K * cinp, cf_p), zero-padded
        wk = jnp.transpose(w.astype(jnp.float32), (2, 1, 0))       # (K, Cin, Cout)
        full = jnp.zeros((K, cinp, cf_p), jnp.float32)
        full = full.at[:, :cin, :filter_channels].set(wk)
        return full.reshape(K * cinp, cf_p)

    def pad_row(v):
        return jnp.zeros((1, cf_p), jnp.float32).at[0, :v.shape[0]].set(v.astype(jnp.float32))

    return {
        "w1": pack_conv(params["conv1_w"], in_channels, cin_p),
        "b1": pad_row(params["conv1_b"]),
        "g1": pad_row(params["ln1_g"]),
        "be1": pad_row(params["ln1_b"]),
        "w2": pack_conv(params["conv2_w"], filter_channels, cf_p),
        "b2": pad_row(params["conv2_b"]),
        "g2": pad_row(params["ln2_g"]),
        "be2": pad_row(params["ln2_b"]),
        "wp": pad_row(params["proj_w"][0, :, 0]),
        "bp": params["proj_b"].reshape(1, 1).astype(jnp.float32),
    }


# ----------------------------------------------------------------------------- wrapper
def duration_predictor_forward(packed, x, x_mask, *, kernel_size, filter_channels, eps=1e-5):
    """x: (B, in_channels, T), x_mask: (B, 1, T)  (PyTorch NCL)  ->  (B, 1, T)."""
    assert kernel_size % 2 == 1, "kernel_size must be odd (PyTorch 'same' padding = k//2)"
    # TODO(synk): speaker-conditioning path (g / self.cond, gin_channels != 0) not implemented.
    B, cin, T = x.shape
    K = kernel_size
    P = K // 2
    cin_p = packed["w1"].shape[0] // K
    cf_p = packed["w1"].shape[1]

    # One shared zero halo of 2*P rows at the front; tail rounds up so conv reads stay
    # in-block. The mask is zero on the halo, so both convs see correct zero padding.
    tp0 = _round_up(T + 4 * P, 8)
    tp1 = tp0 - 2 * P
    tp2 = tp1 - 2 * P

    x_t = jnp.transpose(x.astype(jnp.float32), (0, 2, 1))          # (B, T, Cin)
    m_t = jnp.transpose(x_mask.astype(jnp.float32), (0, 2, 1))     # (B, T, 1)
    x_p = jnp.zeros((B, tp0, cin_p), jnp.float32).at[:, 2 * P:2 * P + T, :cin].set(x_t)
    m_p = jnp.zeros((B, tp0, 1), jnp.float32).at[:, 2 * P:2 * P + T, :].set(m_t)

    # VMEM budget: double-buffered per-batch blocks + resident weights + in-kernel
    # values; clamp to [32 MiB default, 64 MiB v7x physical].
    est = 4 * (2 * (tp0 * (cin_p + 1) + tp2)
               + K * cin_p * cf_p + K * cf_p * cf_p + 9 * cf_p + 1
               + 2 * (K + 4) * tp0 * max(cin_p, cf_p))
    vmem_limit = max(32 * 1024 * 1024, min(2 * est, 64 * 1024 * 1024))

    kern = functools.partial(_duration_predictor_kernel, kernel_size=K,
                             n_channels=filter_channels, eps=eps)
    out = pl.pallas_call(
        kern,
        grid=(B,),
        in_specs=[
            pl.BlockSpec((1, tp0, cin_p), lambda b: (b, 0, 0)),   # x (per-batch block)
            pl.BlockSpec((1, tp0, 1), lambda b: (b, 0, 0)),       # mask
            pl.BlockSpec((K * cin_p, cf_p), lambda b: (0, 0)),    # conv_1 packed weight
            pl.BlockSpec((1, cf_p), lambda b: (0, 0)),            # conv_1 bias
            pl.BlockSpec((1, cf_p), lambda b: (0, 0)),            # norm_1 gamma
            pl.BlockSpec((1, cf_p), lambda b: (0, 0)),            # norm_1 beta
            pl.BlockSpec((K * cf_p, cf_p), lambda b: (0, 0)),     # conv_2 packed weight
            pl.BlockSpec((1, cf_p), lambda b: (0, 0)),            # conv_2 bias
            pl.BlockSpec((1, cf_p), lambda b: (0, 0)),            # norm_2 gamma
            pl.BlockSpec((1, cf_p), lambda b: (0, 0)),            # norm_2 beta
            pl.BlockSpec((1, cf_p), lambda b: (0, 0)),            # proj weight row
            pl.BlockSpec((1, 1), lambda b: (0, 0)),               # proj bias
        ],
        out_specs=pl.BlockSpec((1, tp2, 1), lambda b: (b, 0, 0)),
        out_shape=jax.ShapeDtypeStruct((B, tp2, 1), jnp.float32),
        compiler_params=pltpu.CompilerParams(
            dimension_semantics=("parallel",),   # v7x megacore splits batch elements
            vmem_limit_bytes=vmem_limit,
        ),
    )(x_p, m_p, packed["w1"], packed["b1"], packed["g1"], packed["be1"],
      packed["w2"], packed["b2"], packed["g2"], packed["be2"],
      packed["wp"], packed["bp"])

    return jnp.transpose(out[:, :T, :], (0, 2, 1))                 # (B, 1, T)


# ----------------------------------------------------------------------------- reference
def _reference_forward(p, x, x_mask, kernel_size, eps=1e-5):
    """Pure-JAX (XLA) replica of the PyTorch module in eval mode, for verification."""
    def conv1d(u, w, b, pad):
        out = jax.lax.conv_general_dilated(
            u, w, window_strides=(1,), padding=[(pad, pad)],
            dimension_numbers=("NCH", "OIH", "NCH"),
            precision=jax.lax.Precision.HIGHEST)
        return out + b[None, :, None]

    def ln(u, g, b):
        mean = jnp.mean(u, axis=1, keepdims=True)
        var = jnp.mean((u - mean) ** 2, axis=1, keepdims=True)
        return (u - mean) / jnp.sqrt(var + eps) * g[None, :, None] + b[None, :, None]

    pad = kernel_size // 2
    h = conv1d(x * x_mask, p["conv1_w"], p["conv1_b"], pad)
    h = ln(jnp.maximum(h, 0.0), p["ln1_g"], p["ln1_b"])
    h = conv1d(h * x_mask, p["conv2_w"], p["conv2_b"], pad)
    h = ln(jnp.maximum(h, 0.0), p["ln2_g"], p["ln2_b"])
    h = conv1d(h * x_mask, p["proj_w"], p["proj_b"], 0)
    return h * x_mask


# ----------------------------------------------------------------------------- main
if __name__ == "__main__":
    B, Cin, Cf, K, T = 2, 8, 32, 3, 16

    key = jax.random.PRNGKey(0)
    ks = jax.random.split(key, 11)
    params = {
        "conv1_w": 0.1 * jax.random.normal(ks[0], (Cf, Cin, K), jnp.float32),
        "conv1_b": 0.1 * jax.random.normal(ks[1], (Cf,), jnp.float32),
        "ln1_g": 1.0 + 0.1 * jax.random.normal(ks[2], (Cf,), jnp.float32),
        "ln1_b": 0.1 * jax.random.normal(ks[3], (Cf,), jnp.float32),
        "conv2_w": 0.1 * jax.random.normal(ks[4], (Cf, Cf, K), jnp.float32),
        "conv2_b": 0.1 * jax.random.normal(ks[5], (Cf,), jnp.float32),
        "ln2_g": 1.0 + 0.1 * jax.random.normal(ks[6], (Cf,), jnp.float32),
        "ln2_b": 0.1 * jax.random.normal(ks[7], (Cf,), jnp.float32),
        "proj_w": 0.1 * jax.random.normal(ks[8], (1, Cf, 1), jnp.float32),
        "proj_b": 0.1 * jax.random.normal(ks[9], (1,), jnp.float32),
    }
    x = jax.random.normal(ks[10], (B, Cin, T), jnp.float32)
    lengths = jnp.array([T, T - 5])
    x_mask = (jnp.arange(T)[None, :] < lengths[:, None]).astype(jnp.float32)[:, None, :]

    packed = prepack_params(params, K, Cin, Cf)      # hoisted out of the jitted forward
    fwd = jax.jit(functools.partial(duration_predictor_forward,
                                    kernel_size=K, filter_channels=Cf))
    y = jax.block_until_ready(fwd(packed, x, x_mask))

    y_ref = _reference_forward(params, x, x_mask, K)
    assert y.shape == (B, 1, T), y.shape
    assert bool(jnp.all(jnp.isfinite(y)))
    assert bool(jnp.allclose(y, y_ref, atol=1e-3, rtol=1e-3)), \
        float(jnp.max(jnp.abs(y - y_ref)))
    print("KERNEL_OK")
</pallas_src>

<mosaic_0001>
module attributes {stable_mosaic.version = 11 : i64} {
  func.func @_duration_predictor_kernel(%arg0: i32, %arg1: memref<1x24x128xf32, #tpu.memory_space<vmem>>, %arg2: memref<1x24x1xf32, #tpu.memory_space<vmem>>, %arg3: memref<384x128xf32, #tpu.memory_space<vmem>>, %arg4: memref<1x128xf32, #tpu.memory_space<vmem>>, %arg5: memref<1x128xf32, #tpu.memory_space<vmem>>, %arg6: memref<1x128xf32, #tpu.memory_space<vmem>>, %arg7: memref<384x128xf32, #tpu.memory_space<vmem>>, %arg8: memref<1x128xf32, #tpu.memory_space<vmem>>, %arg9: memref<1x128xf32, #tpu.memory_space<vmem>>, %arg10: memref<1x128xf32, #tpu.memory_space<vmem>>, %arg11: memref<1x128xf32, #tpu.memory_space<vmem>>, %arg12: memref<1x1xf32, #tpu.memory_space<vmem>>, %arg13: memref<1x20x1xf32, #tpu.memory_space<vmem>>) attributes {dimension_semantics = [#tpu.dimension_semantics<parallel>], iteration_bounds = array<i64: 2>, scalar_prefetch = 0 : i64, scratch_operands = 0 : i64, tpu.core_type = #tpu.core_type<tc>, window_params = [{transform_indices = @transform_0, window_bounds = array<i64: 1, 24, 128>}, {transform_indices = @transform_1, window_bounds = array<i64: 1, 24, 1>}, {pipeline_mode = #tpu.pipeline_mode<synchronous>, transform_indices = @transform_2, window_bounds = array<i64: 384, 128>}, {pipeline_mode = #tpu.pipeline_mode<synchronous>, transform_indices = @transform_3, window_bounds = array<i64: 1, 128>}, {pipeline_mode = #tpu.pipeline_mode<synchronous>, transform_indices = @transform_4, window_bounds = array<i64: 1, 128>}, {pipeline_mode = #tpu.pipeline_mode<synchronous>, transform_indices = @transform_5, window_bounds = array<i64: 1, 128>}, {pipeline_mode = #tpu.pipeline_mode<synchronous>, transform_indices = @transform_6, window_bounds = array<i64: 384, 128>}, {pipeline_mode = #tpu.pipeline_mode<synchronous>, transform_indices = @transform_7, window_bounds = array<i64: 1, 128>}, {pipeline_mode = #tpu.pipeline_mode<synchronous>, transform_indices = @transform_8, window_bounds = array<i64: 1, 128>}, {pipeline_mode = #tpu.pipeline_mode<synchronous>, transform_indices = @transform_9, window_bounds = array<i64: 1, 128>}, {pipeline_mode = #tpu.pipeline_mode<synchronous>, transform_indices = @transform_10, window_bounds = array<i64: 1, 128>}, {pipeline_mode = #tpu.pipeline_mode<synchronous>, transform_indices = @transform_11, window_bounds = array<i64: 1, 1>}, {transform_indices = @transform_12, window_bounds = array<i64: 1, 20, 1>}]} {
    %c0 = arith.constant 0 : index
    %c0_0 = arith.constant 0 : index
    %c0_1 = arith.constant 0 : index
    %0 = vector.load %arg1[%c0, %c0_0, %c0_1] : memref<1x24x128xf32, #tpu.memory_space<vmem>>, vector<1x24x128xf32>
    %1 = vector.shape_cast %0 : vector<1x24x128xf32> to vector<24x128xf32>
    %c0_2 = arith.constant 0 : index
    %c0_3 = arith.constant 0 : index
    %c0_4 = arith.constant 0 : index
    %2 = vector.load %arg2[%c0_2, %c0_3, %c0_4] : memref<1x24x1xf32, #tpu.memory_space<vmem>>, vector<1x24x1xf32>
    %3 = vector.shape_cast %2 : vector<1x24x1xf32> to vector<24x1xf32>
    %4 = tpu.iota {dimensions = array<i32: 1>} : vector<1x128xi32>
    %c32_i32 = arith.constant 32 : i32
    %5 = vector.broadcast %c32_i32 : i32 to vector<1x128xi32>
    %6 = arith.cmpi slt, %4, %5 : vector<1x128xi32>
    %7 = arith.extui %6 : vector<1x128xi1> to vector<1x128xi32>
    %8 = arith.sitofp %7 : vector<1x128xi32> to vector<1x128xf32>
    %9 = vector.broadcast %3 : vector<24x1xf32> to vector<24x128xf32>
    %10 = arith.mulf %1, %9 : vector<24x128xf32>
    %11 = vector.extract_strided_slice %10 {offsets = [0, 0], sizes = [22, 128], strides = [1, 1]} : vector<24x128xf32> to vector<22x128xf32>
    %12 = vector.extract_strided_slice %10 {offsets = [1, 0], sizes = [22, 128], strides = [1, 1]} : vector<24x128xf32> to vector<22x128xf32>
    %13 = vector.extract_strided_slice %10 {offsets = [2, 0], sizes = [22, 128], strides = [1, 1]} : vector<24x128xf32> to vector<22x128xf32>
    %14 = tpu.concatenate %11, %12, %13 in 1 : vector<22x128xf32>, vector<22x128xf32>, vector<22x128xf32> -> vector<22x384xf32>
    %c0_5 = arith.constant 0 : index
    %c0_6 = arith.constant 0 : index
    %15 = vector.load %arg3[%c0_5, %c0_6] : memref<384x128xf32, #tpu.memory_space<vmem>>, vector<384x128xf32>
    %cst = arith.constant dense<0.000000e+00> : vector<22x128xf32>
    %16 = tpu.matmul %14, %15, %cst {dimension_numbers = #tpu.dot_dimension_numbers<[1], [0], [0], [1], [0, 0, 1, 1], [], []>} : vector<22x384xf32>, vector<384x128xf32>, vector<22x128xf32> -> vector<22x128xf32>
    %c0_7 = arith.constant 0 : index
    %c0_8 = arith.constant 0 : index
    %17 = vector.load %arg4[%c0_7, %c0_8] : memref<1x128xf32, #tpu.memory_space<vmem>>, vector<1x128xf32>
    %18 = vector.broadcast %17 : vector<1x128xf32> to vector<22x128xf32>
    %19 = arith.addf %16, %18 : vector<22x128xf32>
    %cst_9 = arith.constant 0.000000e+00 : f32
    %20 = vector.broadcast %cst_9 : f32 to vector<22x128xf32>
    %21 = arith.maximumf %19, %20 : vector<22x128xf32>
    %cst_10 = arith.constant dense<0.000000e+00> : vector<22xf32>
    %22 = vector.multi_reduction <add>, %21, %cst_10 [1] : vector<22x128xf32> to vector<22xf32>
    %23 = vector.shape_cast %22 : vector<22xf32> to vector<22x1xf32>
    %cst_11 = arith.constant 3.125000e-02 : f32
    %24 = vector.broadcast %cst_11 : f32 to vector<22x1xf32>
    %25 = arith.mulf %23, %24 : vector<22x1xf32>
    %26 = vector.broadcast %25 : vector<22x1xf32> to vector<22x128xf32>
    %27 = arith.subf %21, %26 : vector<22x128xf32>
    %28 = vector.broadcast %8 : vector<1x128xf32> to vector<22x128xf32>
    %29 = arith.mulf %27, %28 : vector<22x128xf32>
    %30 = arith.mulf %29, %29 : vector<22x128xf32>
    %cst_12 = arith.constant dense<0.000000e+00> : vector<22xf32>
    %31 = vector.multi_reduction <add>, %30, %cst_12 [1] : vector<22x128xf32> to vector<22xf32>
    %32 = vector.shape_cast %31 : vector<22xf32> to vector<22x1xf32>
    %cst_13 = arith.constant 3.125000e-02 : f32
    %33 = vector.broadcast %cst_13 : f32 to vector<22x1xf32>
    %34 = arith.mulf %32, %33 : vector<22x1xf32>
    %cst_14 = arith.constant 9.99999974E-6 : f32
    %35 = vector.broadcast %cst_14 : f32 to vector<22x1xf32>
    %36 = arith.addf %34, %35 : vector<22x1xf32>
    %37 = math.rsqrt %36 : vector<22x1xf32>
    %38 = vector.broadcast %37 : vector<22x1xf32> to vector<22x128xf32>
    %39 = arith.mulf %29, %38 : vector<22x128xf32>
    %c0_15 = arith.constant 0 : index
    %c0_16 = arith.constant 0 : index
    %40 = vector.load %arg5[%c0_15, %c0_16] : memref<1x128xf32, #tpu.memory_space<vmem>>, vector<1x128xf32>
    %41 = vector.broadcast %40 : vector<1x128xf32> to vector<22x128xf32>
    %42 = arith.mulf %39, %41 : vector<22x128xf32>
    %c0_17 = arith.constant 0 : index
    %c0_18 = arith.constant 0 : index
    %43 = vector.load %arg6[%c0_17, %c0_18] : memref<1x128xf32, #tpu.memory_space<vmem>>, vector<1x128xf32>
    %44 = vector.broadcast %43 : vector<1x128xf32> to vector<22x128xf32>
    %45 = arith.addf %42, %44 : vector<22x128xf32>
    %46 = vector.extract_strided_slice %3 {offsets = [1, 0], sizes = [22, 1], strides = [1, 1]} : vector<24x1xf32> to vector<22x1xf32>
    %47 = vector.broadcast %46 : vector<22x1xf32> to vector<22x128xf32>
    %48 = arith.mulf %45, %47 : vector<22x128xf32>
    %49 = vector.extract_strided_slice %48 {offsets = [0, 0], sizes = [20, 128], strides = [1, 1]} : vector<22x128xf32> to vector<20x128xf32>
    %50 = vector.extract_strided_slice %48 {offsets = [1, 0], sizes = [20, 128], strides = [1, 1]} : vector<22x128xf32> to vector<20x128xf32>
    %51 = vector.extract_strided_slice %48 {offsets = [2, 0], sizes = [20, 128], strides = [1, 1]} : vector<22x128xf32> to vector<20x128xf32>
    %52 = tpu.concatenate %49, %50, %51 in 1 : vector<20x128xf32>, vector<20x128xf32>, vector<20x128xf32> -> vector<20x384xf32>
    %c0_19 = arith.constant 0 : index
    %c0_20 = arith.constant 0 : index
    %53 = vector.load %arg7[%c0_19, %c0_20] : memref<384x128xf32, #tpu.memory_space<vmem>>, vector<384x128xf32>
    %cst_21 = arith.constant dense<0.000000e+00> : vector<20x128xf32>
    %54 = tpu.matmul %52, %53, %cst_21 {dimension_numbers = #tpu.dot_dimension_numbers<[1], [0], [0], [1], [0, 0, 1, 1], [], []>} : vector<20x384xf32>, vector<384x128xf32>, vector<20x128xf32> -> vector<20x128xf32>
    %c0_22 = arith.constant 0 : index
    %c0_23 = arith.constant 0 : index
    %55 = vector.load %arg8[%c0_22, %c0_23] : memref<1x128xf32, #tpu.memory_space<vmem>>, vector<1x128xf32>
    %56 = vector.broadcast %55 : vector<1x128xf32> to vector<20x128xf32>
    %57 = arith.addf %54, %56 : vector<20x128xf32>
    %cst_24 = arith.constant 0.000000e+00 : f32
    %58 = vector.broadcast %cst_24 : f32 to vector<20x128xf32>
    %59 = arith.maximumf %57, %58 : vector<20x128xf32>
    %cst_25 = arith.constant dense<0.000000e+00> : vector<20xf32>
    %60 = vector.multi_reduction <add>, %59, %cst_25 [1] : vector<20x128xf32> to vector<20xf32>
    %61 = vector.shape_cast %60 : vector<20xf32> to vector<20x1xf32>
    %cst_26 = arith.constant 3.125000e-02 : f32
    %62 = vector.broadcast %cst_26 : f32 to vector<20x1xf32>
    %63 = arith.mulf %61, %62 : vector<20x1xf32>
    %64 = vector.broadcast %63 : vector<20x1xf32> to vector<20x128xf32>
    %65 = arith.subf %59, %64 : vector<20x128xf32>
    %66 = vector.broadcast %8 : vector<1x128xf32> to vector<20x128xf32>
    %67 = arith.mulf %65, %66 : vector<20x128xf32>
    %68 = arith.mulf %67, %67 : vector<20x128xf32>
    %cst_27 = arith.constant dense<0.000000e+00> : vector<20xf32>
    %69 = vector.multi_reduction <add>, %68, %cst_27 [1] : vector<20x128xf32> to vector<20xf32>
    %70 = vector.shape_cast %69 : vector<20xf32> to vector<20x1xf32>
    %cst_28 = arith.constant 3.125000e-02 : f32
    %71 = vector.broadcast %cst_28 : f32 to vector<20x1xf32>
    %72 = arith.mulf %70, %71 : vector<20x1xf32>
    %cst_29 = arith.constant 9.99999974E-6 : f32
    %73 = vector.broadcast %cst_29 : f32 to vector<20x1xf32>
    %74 = arith.addf %72, %73 : vector<20x1xf32>
    %75 = math.rsqrt %74 : vector<20x1xf32>
    %76 = vector.broadcast %75 : vector<20x1xf32> to vector<20x128xf32>
    %77 = arith.mulf %67, %76 : vector<20x128xf32>
    %c0_30 = arith.constant 0 : index
    %c0_31 = arith.constant 0 : index
    %78 = vector.load %arg9[%c0_30, %c0_31] : memref<1x128xf32, #tpu.memory_space<vmem>>, vector<1x128xf32>
    %79 = vector.broadcast %78 : vector<1x128xf32> to vector<20x128xf32>
    %80 = arith.mulf %77, %79 : vector<20x128xf32>
    %c0_32 = arith.constant 0 : index
    %c0_33 = arith.constant 0 : index
    %81 = vector.load %arg10[%c0_32, %c0_33] : memref<1x128xf32, #tpu.memory_space<vmem>>, vector<1x128xf32>
    %82 = vector.broadcast %81 : vector<1x128xf32> to vector<20x128xf32>
    %83 = arith.addf %80, %82 : vector<20x128xf32>
    %84 = vector.extract_strided_slice %3 {offsets = [2, 0], sizes = [20, 1], strides = [1, 1]} : vector<24x1xf32> to vector<20x1xf32>
    %85 = vector.broadcast %84 : vector<20x1xf32> to vector<20x128xf32>
    %86 = arith.mulf %83, %85 : vector<20x128xf32>
    %c0_34 = arith.constant 0 : index
    %c0_35 = arith.constant 0 : index
    %87 = vector.load %arg11[%c0_34, %c0_35] : memref<1x128xf32, #tpu.memory_space<vmem>>, vector<1x128xf32>
    %88 = vector.broadcast %87 : vector<1x128xf32> to vector<20x128xf32>
    %89 = arith.mulf %86, %88 : vector<20x128xf32>
    %cst_36 = arith.constant dense<0.000000e+00> : vector<20xf32>
    %90 = vector.multi_reduction <add>, %89, %cst_36 [1] : vector<20x128xf32> to vector<20xf32>
    %91 = vector.shape_cast %90 : vector<20xf32> to vector<20x1xf32>
    %c0_37 = arith.constant 0 : index
    %c0_38 = arith.constant 0 : index
    %92 = vector.load %arg12[%c0_37, %c0_38] : memref<1x1xf32, #tpu.memory_space<vmem>>, vector<1x1xf32>
    %93 = vector.broadcast %92 : vector<1x1xf32> to vector<20x1xf32>
    %94 = arith.addf %91, %93 : vector<20x1xf32>
    %95 = vector.extract_strided_slice %3 {offsets = [2, 0], sizes = [20, 1], strides = [1, 1]} : vector<24x1xf32> to vector<20x1xf32>
    %96 = arith.mulf %94, %95 : vector<20x1xf32>
    %c0_39 = arith.constant 0 : index
    %c0_40 = arith.constant 0 : index
    %c0_41 = arith.constant 0 : index
    %97 = vector.load %arg13[%c0_39, %c0_40, %c0_41] : memref<1x20x1xf32, #tpu.memory_space<vmem>>, vector<1x20x1xf32>
    %98 = vector.shape_cast %97 : vector<1x20x1xf32> to vector<20x1xf32>
    %99 = vector.shape_cast %96 : vector<20x1xf32> to vector<1x20x1xf32>
    tpu.vector_store %arg13[%c0_39, %c0_40, %c0_41], %99 {strides = array<i32>} : memref<1x20x1xf32, #tpu.memory_space<vmem>>, vector<1x20x1xf32>,
    return
  }
  func.func @transform_0(%arg0: i32) -> (i32, i32, i32) {
    %c0_i32 = arith.constant 0 : i32
    %c0_i32_0 = arith.constant 0 : i32
    %c0_i32_1 = arith.constant 0 : i32
    return %arg0, %c0_i32, %c0_i32_0 : i32, i32, i32
  }
  func.func @transform_1(%arg0: i32) -> (i32, i32, i32) {
    %c0_i32 = arith.constant 0 : i32
    %c0_i32_0 = arith.constant 0 : i32
    %c0_i32_1 = arith.constant 0 : i32
    return %arg0, %c0_i32, %c0_i32_0 : i32, i32, i32
  }
  func.func @transform_2(%arg0: i32) -> (i32, i32) {
    %c0_i32 = arith.constant 0 : i32
    %c0_i32_0 = arith.constant 0 : i32
    %c0_i32_1 = arith.constant 0 : i32
    return %c0_i32, %c0_i32_0 : i32, i32
  }
  func.func @transform_3(%arg0: i32) -> (i32, i32) {
    %c0_i32 = arith.constant 0 : i32
    %c0_i32_0 = arith.constant 0 : i32
    %c0_i32_1 = arith.constant 0 : i32
    return %c0_i32, %c0_i32_0 : i32, i32
  }
  func.func @transform_4(%arg0: i32) -> (i32, i32) {
    %c0_i32 = arith.constant 0 : i32
    %c0_i32_0 = arith.constant 0 : i32
    %c0_i32_1 = arith.constant 0 : i32
    return %c0_i32, %c0_i32_0 : i32, i32
  }
  func.func @transform_5(%arg0: i32) -> (i32, i32) {
    %c0_i32 = arith.constant 0 : i32
    %c0_i32_0 = arith.constant 0 : i32
    %c0_i32_1 = arith.constant 0 : i32
    return %c0_i32, %c0_i32_0 : i32, i32
  }
  func.func @transform_6(%arg0: i32) -> (i32, i32) {
    %c0_i32 = arith.constant 0 : i32
    %c0_i32_0 = arith.constant 0 : i32
    %c0_i32_1 = arith.constant 0 : i32
    return %c0_i32, %c0_i32_0 : i32, i32
  }
  func.func @transform_7(%arg0: i32) -> (i32, i32) {
    %c0_i32 = arith.constant 0 : i32
    %c0_i32_0 = arith.constant 0 : i32
    %c0_i32_1 = arith.constant 0 : i32
    return %c0_i32, %c0_i32_0 : i32, i32
  }
  func.func @transform_8(%arg0: i32) -> (i32, i32) {
    %c0_i32 = arith.constant 0 : i32
    %c0_i32_0 = arith.constant 0 : i32
    %c0_i32_1 = arith.constant 0 : i32
    return %c0_i32, %c0_i32_0 : i32, i32
  }
  func.func @transform_9(%arg0: i32) -> (i32, i32) {
    %c0_i32 = arith.constant 0 : i32
    %c0_i32_0 = arith.constant 0 : i32
    %c0_i32_1 = arith.constant 0 : i32
    return %c0_i32, %c0_i32_0 : i32, i32
  }
  func.func @transform_10(%arg0: i32) -> (i32, i32) {
    %c0_i32 = arith.constant 0 : i32
    %c0_i32_0 = arith.constant 0 : i32
    %c0_i32_1 = arith.constant 0 : i32
    return %c0_i32, %c0_i32_0 : i32, i32
  }
  func.func @transform_11(%arg0: i32) -> (i32, i32) {
    %c0_i32 = arith.constant 0 : i32
    %c0_i32_0 = arith.constant 0 : i32
    %c0_i32_1 = arith.constant 0 : i32
    return %c0_i32, %c0_i32_0 : i32, i32
  }
  func.func @transform_12(%arg0: i32) -> (i32, i32, i32) {
    %c0_i32 = arith.constant 0 : i32
    %c0_i32_0 = arith.constant 0 : i32
    %c0_i32_1 = arith.constant 0 : i32
    return %arg0, %c0_i32, %c0_i32_0 : i32, i32, i32
  }
}

</mosaic_0001>

<bundles_post_ra>
// kernel: duration_predictor_forward.1
= control target key start
LH: loop header
LB: loop body
LE: loop exit
PB: predicated region body
PF: predicated region fallthrough
CT: control target
= control target key end

     0   :  { %s1997_s0 = inlined_call_operand.vmem [shape: f32[2,24,128], index: 0, kind: input, shape index: {}]   ;;  %s1998_s1 = inlined_call_operand.vmem [shape: f32[2,24,1], index: 1, kind: input, shape index: {}]   ;;  %s1999_s2 = inlined_call_operand.hbm [shape: f32[384,128], index: 2, kind: input, shape index: {}]   ;;  %s2000_s3 = inlined_call_operand.vmem [shape: f32[1,128], index: 3, kind: input, shape index: {}]   ;;  %s2001_s4 = inlined_call_operand.vmem [shape: f32[1,128], index: 4, kind: input, shape index: {}]   ;;  %s2002_s5 = inlined_call_operand.vmem [shape: f32[1,128], index: 5, kind: input, shape index: {}]   ;;  %s2003_s6 = inlined_call_operand.hbm [shape: f32[384,128], index: 6, kind: input, shape index: {}]   ;;  %s2004_s7 = inlined_call_operand.vmem [shape: f32[1,128], index: 7, kind: input, shape index: {}]   ;;  %s2005_s8 = inlined_call_operand.vmem [shape: f32[1,128], index: 8, kind: input, shape index: {}]   ;;  %s2006_s9 = inlined_call_operand.vmem [shape: f32[1,128], index: 9, kind: input, shape index: {}]   ;;  %s2007_s10 = inlined_call_operand.vmem [shape: f32[1,128], index: 10, kind: input, shape index: {}]   ;;  %s2008_s11 = inlined_call_operand.<no memory space> [shape: f32[1,1], index: 11, kind: input, shape index: {}]   ;;  %s2009_s12 = inlined_call_operand.vmem [shape: f32[2,20,1], index: 12, kind: output, shape index: {}]  }
   0x1   :  { %v17_v0 = vstv %s2008_s11 }
   0x2   :  { %18 = vst [vmem:[#allocation2] sm:$0x1] %v17_v0 }
   0x3   :  { %19 = vsyncpa [#allocation4], 0 }
   0x4   :  { %20 = vsyncpa [#allocation6], 0  ;;  %s1777_s23 = smov 0  }
   0x5 LB: > { %s1783_s24 = sadd.s32 4294967295, %s1699_s23   ;;  %p1244_p0 = scmp.ge.s32.totalorder %s1699_s23, 1  ;;  %s1699_s23 = sphi %s1777_s23, %s26_s23  }
   0x6   : > { %p319_p1 = scmp.lt.s32.totalorder %s1699_s23, 3  ;;  %s1701_s11 = smov [#allocation3]  }
   0x7   : > { %s331_s25 = sshll.u32 %s1701_s11, 4  ;;  %p2010_p3 = scmp.eq.s32.totalorder %s1783_s24, 0  ;;  %s332_s25 = int_to_ptr.vmem [resolvable:$true] %s331_s25 }
   0x8   : > { %p1787_p2 = pnand %p1244_p0, %p319_p1  ;;  %s1702_s27 = smov [#allocation5]  }
   0x9   : > { %s353_s28 = sshll.u32 %s1702_s27, 4  ;;  %s1629_s14 = scalar_lea.hbm %s1999_s2, 6144  ;;  %s1800_s28 = int_to_ptr.vmem [resolvable:$true] %s353_s28 }
   0xa   : > { %s2012_s26 = scalar_select %p1787_p2, 1, 0 }
   0xb   : > { %p1588_p4 = pneg %p1787_p2  ;;  %p1630_p6 = scmp.ne.s32.totalorder %s1999_s2, %s1629_s14 }
   0xc   : > { %p1636_p10 = scmp.lt.u32.totalorder %s1629_s14, %s1999_s2 }
   0xd   : > { %p1796_p5 = pnand %p2010_p3, %p1588_p4 }
   0xf   : > { %p1631_p7 = pneg %p1796_p5 }
  0x11   : > { %p1632_p8 = pnand %p1631_p7, %p1630_p6 }
  0x13   : > { %p1633_p9 = pneg %p1632_p8 }
  0x15   : > { %p1638_p11 = pnand %p1636_p10, %p1633_p9 }
  0x17   : > { %1641 = shalt.err (!%p1638_p11)
}
  0x18   : > { %s1642_s19 = scalar_lea.vmem %s332_s25, 6144  ;;  %p1650_p1 = scmp.lt.s32.totalorder %s332_s25, %s332_s25 }
  0x19   : > { %p1643_p12 = scmp.ne.s32.totalorder %s332_s25, %s1642_s19  ;;  %p1651_p4 = scmp.lt.s32.totalorder %s1642_s19, %s1642_s19 }
  0x1b   : > { %p1645_p13 = pnand %p1643_p12, %p1631_p7  ;;  %p1652_p3 = por %p1651_p4, %p1650_p1 }
  0x1d   : > { %p1646_p0 = pneg %p1645_p13 }
  0x1f   : > { %p1653_p2 = pnand %p1652_p3, %p1646_p0 }
  0x21   : > { %1656 = shalt.err (!%p1653_p2)
}
  0x22   : > { %s1703_s20 = smov 128   ;;  %s1704_s21 = smov 8  }
  0x23   : > { %1591 = dma.hbm_to_vmem [thread:$0]  (!%p1796_p5), %s1999_s2, 6144, %s332_s25, [#allocation4], %s1703_s20, %s1703_s20, %s1704_s21  }
  0x24   : > { %s1657_s13 = scalar_lea.hbm %s2003_s6, 6144 }
  0x25   : > { %p1658_p6 = scmp.ne.s32.totalorder %s2003_s6, %s1657_s13  ;;  %p1664_p8 = scmp.lt.u32.totalorder %s1657_s13, %s2003_s6 }
  0x27   : > { %p1660_p2 = pnand %p1658_p6, %p1631_p7 }
  0x29   : > { %p1661_p3 = pneg %p1660_p2 }
  0x2b   : > { %p1666_p9 = pnand %p1664_p8, %p1661_p3 }
  0x2d   : > { %1669 = shalt.err (!%p1666_p9)
}
  0x2e   : > { %s1670_s25 = scalar_lea.vmem %s1800_s28, 6144  ;;  %p1678_p13 = scmp.lt.s32.totalorder %s1800_s28, %s1800_s28 }
  0x2f   : > { %p1671_p10 = scmp.ne.s32.totalorder %s1800_s28, %s1670_s25  ;;  %p1679_p0 = scmp.lt.s32.totalorder %s1670_s25, %s1670_s25 }
  0x31   : > { %p1673_p11 = pnand %p1671_p10, %p1631_p7  ;;  %p1680_p1 = por %p1679_p0, %p1678_p13 }
  0x33   : > { %p1674_p12 = pneg %p1673_p11 }
  0x35   : > { %p1681_p4 = pnand %p1680_p1, %p1674_p12 }
  0x37   : > { %1684 = shalt.err (!%p1681_p4)
}
  0x38   : > { %1594 = dma.hbm_to_vmem [thread:$0]  (!%p1796_p5), %s2003_s6, 6144, %s1800_s28, [#allocation6], %s1703_s20, %s1703_s20, %s1704_s21  }
  0x39   : > { %p2014_p6 = scmp.ne.s32.totalorder %s2012_s26, 0 }
  0x3a   : > { %p2015_p2 = scmp.eq.s32.totalorder (!%p2014_p6), %s1783_s24, 0 }
  0x3b   : > { %400 = sbr.rel (%p2014_p6) target bundleno = 1460 (0x5b4), region = 68 }
  0x42   : > { %1690 = dma.done.wait (%p2015_p2), [#allocation4], 6144   ;;  %p2016_p7 = pmov %p2015_p2 }
  0x43   : > { %p2017_p3 = pmov %p2015_p2 }
  0x44   : > { %1692 = vsyncadd (%p2016_p7), [#allocation4], 4294961152 }
  0x45   : > { %1694 = dma.done.wait (%p2017_p3), [#allocation6], 6144   ;;  %p2018_p8 = pmov %p2015_p2 }
  0x46   : > { %p451_p9 = scmp.lt.s32.totalorder %s1783_s24, 1  ;;  %v1705_v1 = vmov 0   ;;  %v1706_v2 = vmov 0.0|0.0   ;;  %v532_v6 = vld [vmem:[#allocation3 + $0x80] sm:$0xff]  ;;  %v533_v7 = vld [vmem:[#allocation3 + $0x88] sm:$0xff]  ;;  %v534_v15 = vld [vmem:[#allocation3 + $0x90] sm:$0xff] }
  0x47   : > { %1696 = vsyncadd (%p2018_p8), [#allocation6], 4294961152  ;;  %1615 = vset.pattern.permute.xlu0 %v1705_v1  ;;  %1616 = vset.pattern.permute.xlu1 %v1705_v1  ;;  %v548_v8 = vld [vmem:[#allocation3 + $0x100] sm:$0xff]  ;;  %v1467_v9 = vpack.c.bf16 %v533_v7, %v532_v6  ;;  %v549_v10 = vld [vmem:[#allocation3 + $0x108] sm:$0xff]  ;;  %vm1707_vm0 = vmmov 0   ;;  %v1708_v33 = vmov 0.0  }
  0x48   : > { %s2020_s24 = smov (!%p451_p9, %s1783_s24), 1  ;;  %1499 = vmatprep.subr.bf16.mxu1 %v1706_v2  ;;  %v516_v11 = vld [vmem:[#allocation3] sm:$0xff]  ;;  %v517_v12 = vld [vmem:[#allocation3 + $0x8] sm:$0xff]  ;;  %v1500_v13 = vpack.c.bf16 %v549_v10, %v548_v8  ;;  %v535_v16 = vld [vmem:[#allocation3 + $0x98] sm:$0xff]  ;;  %1417 = vmatprep.mubr.msk.f32.mxu1 %vm1707_vm0, %v1708_v33  ;;  %vm498_vm1 = vcmask 1046528   ;;  %vm507_vm2 = vcmask 1045504  }
  0x49   : > { %s1862_s26 = smul.u32 24, %s2020_s24  ;;  %v1469_v14 = vpack.c.bf16 %v517_v12, %v516_v11  ;;  %v550_v17 = vld [vmem:[#allocation3 + $0x110] sm:$0xff]  ;;  %1468 = vmatprep.subr.bf16.mxu0 %v1467_v9  ;;  %v1471_v18 = vpack.c.bf16 %v535_v16, %v534_v15  ;;  %v551_v19 = vld [vmem:[#allocation3 + $0x118] sm:$0xff]  ;;  %v536_v23 = vld [vmem:[#allocation3 + $0xa0] sm:$0xff]  ;;  %vm1044_vm4 = vcmask 1043456   ;;  %vm1148_vm5 = vcmask 7168  }
  0x4a   : > { %v518_v20 = vld [vmem:[#allocation3 + $0x10] sm:$0xff]  ;;  %v519_v21 = vld [vmem:[#allocation3 + $0x18] sm:$0xff]  ;;  %1501 = vmatpush3.bf16.msra.mxu1 %v1500_v13  ;;  %v1503_v22 = vpack.c.bf16 %v551_v19, %v550_v17  ;;  %v537_v24 = vld [vmem:[#allocation3 + $0xa8] sm:$0xff]  ;;  %vm1151_vm6 = vcmask 3072  }
  0x4b   : > { %s460_s20 = scalar_lea.vmem %s1998_s1, %s1862_s26  ;;  %1470 = vmatpush3.bf16.msra.mxu0 %v1469_v14  ;;  %1502 = vmatprep.subr.bf16.mxu1 %v1706_v2  ;;  %v1473_v25 = vpack.c.bf16 %v519_v21, %v518_v20  ;;  %v552_v26 = vld [vmem:[#allocation3 + $0x120] sm:$0xff]  ;;  %v553_v27 = vld [vmem:[#allocation3 + $0x128] sm:$0xff]  ;;  %v1475_v28 = vpack.c.bf16 %v537_v24, %v536_v23  ;;  %v538_v31 = vld [vmem:[#allocation3 + $0xb0] sm:$0xff]  ;;  %s455_s22 = scalar_lea.vmem %s1997_s0, %s1862_s26 }
  0x4c   : > { %v1868_v3 = vld [vmem:[%s460_s20] sm:$0xff]  ;;  %v1870_v4 = vld [vmem:[%s460_s20 + $0x10] sm:$0xff]  ;;  %v1872_v5 = vld [vmem:[%s460_s20 + $0x8] sm:$0xff]  ;;  %1472 = vmatprep.subr.bf16.mxu0 %v1471_v18  ;;  %v1506_v34 = vpack.c.bf16 %v553_v27, %v552_v26 }
  0x4d   : > { %479 = vperm.xlu0 %1615, %v1868_v3   ;;  %489 = vperm.xlu1 %1616, %v1870_v4   ;;  %v520_v29 = vld [vmem:[#allocation3 + $0x20] sm:$0xff]  ;;  %v521_v30 = vld [vmem:[#allocation3 + $0x28] sm:$0xff]  ;;  %v539_v32 = vld [vmem:[#allocation3 + $0xb8] sm:$0xff] }
  0x4e   : > { %1504 = vmatpush3.bf16.msra.mxu1 %v1503_v22  ;;  %v1477_v35 = vpack.c.bf16 %v521_v30, %v520_v29  ;;  %v554_v36 = vld [vmem:[#allocation3 + $0x130] sm:$0xff]  ;;  %v555_v37 = vld [vmem:[#allocation3 + $0x138] sm:$0xff]  ;;  %v1479_v38 = vpack.c.bf16 %v539_v32, %v538_v31  ;;  %v540_v41 = vld [vmem:[#allocation3 + $0xc0] sm:$0xff] }
  0x4f   : > { %1474 = vmatpush3.bf16.msra.mxu0 %v1473_v25  ;;  %1505 = vmatprep.subr.bf16.mxu1 %v1706_v2  ;;  %v522_v39 = vld [vmem:[#allocation3 + $0x30] sm:$0xff]  ;;  %v523_v40 = vld [vmem:[#allocation3 + $0x38] sm:$0xff]  ;;  %v541_v42 = vld [vmem:[#allocation3 + $0xc8] sm:$0xff]  ;;  %v1509_v43 = vpack.c.bf16 %v555_v37, %v554_v36 }
  0x50   : > { %1476 = vmatprep.subr.bf16.mxu0 %v1475_v28  ;;  %v1481_v44 = vpack.c.bf16 %v523_v40, %v522_v39  ;;  %v556_v45 = vld [vmem:[#allocation3 + $0x140] sm:$0xff]  ;;  %v557_v46 = vld [vmem:[#allocation3 + $0x148] sm:$0xff]  ;;  %v1483_v47 = vpack.c.bf16 %v541_v42, %v540_v41  ;;  %v542_v50 = vld [vmem:[#allocation3 + $0xd0] sm:$0xff] }
  0x51   : > { %484 = vperm.xlu0 %1615, %v1872_v5   ;;  %v524_v48 = vld [vmem:[#allocation3 + $0x40] sm:$0xff]  ;;  %v525_v49 = vld [vmem:[#allocation3 + $0x48] sm:$0xff]  ;;  %v543_v51 = vld [vmem:[#allocation3 + $0xd8] sm:$0xff]  ;;  %v1512_v52 = vpack.c.bf16 %v557_v46, %v556_v45 }
  0x52   : > { %1507 = vmatpush3.bf16.msra.mxu1 %v1506_v34  ;;  %v1485_v53 = vpack.c.bf16 %v525_v49, %v524_v48  ;;  %v558_v54 = vld [vmem:[#allocation3 + $0x150] sm:$0xff]  ;;  %v559_v55 = vld [vmem:[#allocation3 + $0x158] sm:$0xff]  ;;  %v1487_v56 = vpack.c.bf16 %v543_v51, %v542_v50  ;;  %v544_v59 = vld [vmem:[#allocation3 + $0xe0] sm:$0xff] }
  0x53   : > { %1478 = vmatpush3.bf16.msra.mxu0 %v1477_v35  ;;  %1508 = vmatprep.subr.bf16.mxu1 %v1706_v2  ;;  %v526_v57 = vld [vmem:[#allocation3 + $0x50] sm:$0xff]  ;;  %v527_v58 = vld [vmem:[#allocation3 + $0x58] sm:$0xff]  ;;  %v545_v60 = vld [vmem:[#allocation3 + $0xe8] sm:$0xff]  ;;  %v1515_v61 = vpack.c.bf16 %v559_v55, %v558_v54 }
  0x54   : > { %1480 = vmatprep.subr.bf16.mxu0 %v1479_v38  ;;  %v1489_v62 = vpack.c.bf16 %v527_v58, %v526_v57  ;;  %v560_v63 = vld [vmem:[#allocation3 + $0x160] sm:$0xff]  ;;  %v561_v0 = vld [vmem:[#allocation3 + $0x168] sm:$0xff]  ;;  %v1491_v1 = vpack.c.bf16 %v545_v60, %v544_v59  ;;  %v546_v8 = vld [vmem:[#allocation3 + $0xf0] sm:$0xff] }
  0x55   : > { %v528_v6 = vld [vmem:[#allocation3 + $0x60] sm:$0xff]  ;;  %v529_v7 = vld [vmem:[#allocation3 + $0x68] sm:$0xff]  ;;  %v547_v9 = vld [vmem:[#allocation3 + $0xf8] sm:$0xff]  ;;  %v1518_v10 = vpack.c.bf16 %v561_v0, %v560_v63 }
  0x56   : > { %1510 = vmatpush3.bf16.msra.mxu1 %v1509_v43  ;;  %v1493_v11 = vpack.c.bf16 %v529_v7, %v528_v6  ;;  %v562_v12 = vld [vmem:[#allocation3 + $0x170] sm:$0xff]  ;;  %v563_v13 = vld [vmem:[#allocation3 + $0x178] sm:$0xff]  ;;  %v1495_v14 = vpack.c.bf16 %v547_v9, %v546_v8  ;;  %v467_v24 = vld [vmem:[%s455_s22 + $0x8] sm:$0xff] }
  0x57   : > { %1482 = vmatpush3.bf16.msra.mxu0 %v1481_v44  ;;  %1511 = vmatprep.subr.bf16.mxu1 %v1706_v2  ;;  %v530_v15 = vld [vmem:[#allocation3 + $0x70] sm:$0xff]  ;;  %v531_v16 = vld [vmem:[#allocation3 + $0x78] sm:$0xff]  ;;  %v1521_v17 = vpack.c.bf16 %v563_v13, %v562_v12  ;;  %v839_v6 = vld [vmem:[#allocation5 + $0x88] sm:$0xff] }
  0x58   : > { %1484 = vmatprep.subr.bf16.mxu0 %v1483_v47  ;;  %v1497_v18 = vpack.c.bf16 %v531_v16, %v530_v15  ;;  %v466_v19 = vld [vmem:[%s455_s22] sm:$0xff]  ;;  %v468_v22 = vld [vmem:[%s455_s22 + $0x10] sm:$0xff]  ;;  %s465_s22 = scalar_lea.vmem %s2009_s12, %s1862_s26 }
  0x59   : > { %v1255_v42 = vld [vmem:[%s2000_s3] ss:$0 sm:$0xff]  ;;  %v854_v7 = vld [vmem:[#allocation5 + $0x100] sm:$0xff]  ;;  %v855_v9 = vld [vmem:[#allocation5 + $0x108] sm:$0xff] }
  0x5a   : > { %1513 = vmatpush3.bf16.msra.mxu1 %v1512_v52 }
  0x5b   : > { %1486 = vmatpush3.bf16.msra.mxu0 %v1485_v53  ;;  %1514 = vmatprep.subr.bf16.mxu1 %v1706_v2 }
  0x5c   : > { %1488 = vmatprep.subr.bf16.mxu0 %v1487_v56 }
  0x5e   : > { %1516 = vmatpush3.bf16.msra.mxu1 %v1515_v61 }
  0x5f   : > { %1490 = vmatpush3.bf16.msra.mxu0 %v1489_v62  ;;  %1517 = vmatprep.subr.bf16.mxu1 %v1706_v2 }
  0x60   : > { %1492 = vmatprep.subr.bf16.mxu0 %v1491_v1  ;;  %v838_v1 = vld [vmem:[#allocation5 + $0x80] sm:$0xff] }
  0x61   : > { %v1523_v8 = vpack.c.bf16 %v839_v6, %v838_v1  ;;  %v847_v1 = vld [vmem:[#allocation5 + $0xc8] sm:$0xff]  ;;  %v862_v6 = vld [vmem:[#allocation5 + $0x140] sm:$0xff] }
  0x62   : > { %1519 = vmatpush3.bf16.msra.mxu1 %v1518_v10  ;;  %v1556_v10 = vpack.c.bf16 %v855_v9, %v854_v7  ;;  %v830_v9 = vld [vmem:[#allocation5 + $0x40] sm:$0xff] }
  0x63   : > { %1494 = vmatpush3.bf16.msra.mxu0 %v1493_v11  ;;  %1520 = vmatprep.subr.bf16.mxu1 %v1706_v2  ;;  %v472_v11 = vlaneseq }
  0x64   : > { %1496 = vmatprep.subr.bf16.mxu0 %v1495_v14 }
  0x65   : > { %v473_v12 = vand.u32 127, %v472_v11 }
  0x66   : > { %1522 = vmatpush3.bf16.msra.mxu1 %v1521_v17 }
  0x67   : > { %1498 = vmatpush3.bf16.msra.mxu0 %v1497_v18  ;;  %1555 = vmatprep.subr.bf16.mxu1 %v1706_v2  ;;  %vm474_vm3 = vcmp.lt.s32.totalorder %v473_v12, 32 }
  0x68   : > { %1524 = vmatprep.subr.bf16.mxu0 %v1523_v8  ;;  %v1916_v15 = vsel %vm474_vm3, 1.0, %v1708_v33  ;;  %v863_v8 = vld [vmem:[#allocation5 + $0x148] sm:$0xff] }
  0x69   : > { %v1568_v11 = vpack.c.bf16 %v863_v8, %v862_v6 }
  0xcc   : > { %v1891_v20 = vpop.permute.xlu0 %479  ;;  %v1893_v21 = vpop.permute.xlu1 %489 }
  0xcd   : > { %v492_v23 = vmul.f32 %v1891_v20, %v466_v19  ;;  %v494_v25 = vmul.f32 %v1893_v21, %v468_v22  ;;  %v795_v6 = vrot.slane %v1893_v21, 1 }
  0xcf   : > { %v499_v28 = vrot.slane %v492_v23, 1  ;;  %v508_v30 = vrot.slane %v492_v23, 2  ;;  %v502_v32 = vrot.slane %v494_v25, 1  ;;  %v511_v36 = vrot.slane %v494_v25, 2 }
  0xd0   : > { %v1897_v26 = vpop.permute.xlu0 %484 }
  0xd1   : > { %v493_v27 = vmul.f32 %v1897_v26, %v467_v24 }
  0xd3   : > { %v500_v29 = vrot.slane %v493_v27, 1  ;;  %v509_v31 = vrot.slane %v493_v27, 2 }
  0xd5   : > { %v501_v34 = vsel %vm498_vm1, %v499_v28, %v500_v29  ;;  %v510_v35 = vsel %vm507_vm2, %v508_v30, %v509_v31  ;;  %v503_v37 = vsel %vm498_vm1, %v500_v29, %v502_v32  ;;  %v512_v38 = vsel %vm507_vm2, %v509_v31, %v511_v36 }
  0xd6   : > { %635 = vmatprep.mubr.f32.mxu0 %v501_v34  ;;  %1418 = vmatmul.mubr.f32.vlgmr.msra.gmra.mrb[0].mxu1 %v510_v35  ;;  %v822_v34 = vld [vmem:[#allocation5] sm:$0xff]  ;;  %v823_v35 = vld [vmem:[#allocation5 + $0x8] sm:$0xff] }
  0xd7   : > { %636 = vmatmul.mubr.f32.vlgmr.msra.gmra.mrb[0].mxu0 %v492_v23  ;;  %1420 = vmatprep.mubr.msk.f32.mxu1 %vm1707_vm0, %v1708_v33 }
  0xd8   : > { %640 = vmatprep.mubr.f32.mxu0 %v503_v37  ;;  %1557 = vmatpush3.bf16.msra.mxu1 %v1556_v10  ;;  %v840_v37 = vld [vmem:[#allocation5 + $0x90] sm:$0xff]  ;;  %v831_v10 = vld [vmem:[#allocation5 + $0x48] sm:$0xff] }
  0xd9   : > { %1558 = vmatprep.subr.bf16.mxu1 %v1706_v2  ;;  %v1541_v12 = vpack.c.bf16 %v831_v10, %v830_v9 }
  0xda   : > { %1421 = vmatmul.mubr.f32.gmra.mrb[2].mxu1 %v512_v38  ;;  %v841_v38 = vld [vmem:[#allocation5 + $0x98] sm:$0xff] }
  0xdb   : > { %641 = vmatmul.mubr.f32.gmra.mrb[2].mxu0 %v493_v27  ;;  %1423 = vmatprep.mubr.msk.f32.mxu1 %vm1707_vm0, %v1708_v33 }
  0xdc   : > { %645 = vmatprep.mubr.f32.mxu0 %v502_v32 }
  0xde   : > { %1424 = vmatmul.mubr.f32.gmra.mrb[4].mxu1 %v511_v36  ;;  %v1525_v36 = vpack.c.bf16 %v823_v35, %v822_v34  ;;  %v867_v34 = vld [vmem:[#allocation5 + $0x168] sm:$0xff]  ;;  %v834_v35 = vld [vmem:[#allocation5 + $0x60] sm:$0xff] }
  0xdf   : > { %646 = vmatmul.mubr.f32.gmra.mrb[4].mxu0 %v494_v25  ;;  %1458 = vmatprep.mubr.msk.f32.mxu1 %vm1707_vm0, %v1708_v33 }
  0xe0   : > { %1526 = vmatpush3.bf16.msra.mxu0 %v1525_v36  ;;  %v835_v36 = vld [vmem:[#allocation5 + $0x68] sm:$0xff] }
 0x1a9   : > { %v717_v39 = vpop.f32.mrb[0].mxu1 }
 0x1aa   : > { %v1297_v40 = vpop.f32.mrb[0].mxu0  ;;  %v1419_v41 = vpop.f32.mrb[1].mxu1 }
 0x1ab   : > { %v1298_v43 = vpop.f32.mrb[1].mxu0  ;;  %v857_v41 = vld [vmem:[#allocation5 + $0x118] sm:$0xff] }
 0x1ac   : > { %v1299_v44 = vadd.f32 %v1298_v43, %v1297_v40  ;;  %v1527_v40 = vpack.c.bf16 %v841_v38, %v840_v37  ;;  %v825_v43 = vld [vmem:[#allocation5 + $0x18] sm:$0xff]  ;;  %v1549_v38 = vpack.c.bf16 %v835_v36, %v834_v35 }
 0x1ad   : > { %v722_v45 = vpop.f32.mrb[2].mxu1  ;;  %v1258_v36 = vld [vmem:[%s2004_s7] ss:$0 sm:$0xff] }
 0x1ae   : > { %v638_v46 = vadd.f32 %v1299_v44, %v1255_v42  ;;  %v1300_v47 = vpop.f32.mrb[2].mxu0  ;;  %v1422_v48 = vpop.f32.mrb[3].mxu1  ;;  %1528 = vmatprep.subr.bf16.mxu0 %v1527_v40  ;;  %v853_v40 = vld [vmem:[#allocation5 + $0xf8] sm:$0xff] }
 0x1af   : > { %v1301_v49 = vpop.f32.mrb[3].mxu0  ;;  %v858_v48 = vld [vmem:[#allocation5 + $0x120] sm:$0xff] }
 0x1b0   : > { %v1302_v50 = vadd.f32 %v1301_v49, %v1300_v47  ;;  %v718_v51 = vadd.f32 %v717_v39, %v638_v46  ;;  %v856_v39 = vld [vmem:[#allocation5 + $0x110] sm:$0xff]  ;;  %v842_v46 = vld [vmem:[#allocation5 + $0xa0] sm:$0xff]  ;;  %v843_v47 = vld [vmem:[#allocation5 + $0xa8] sm:$0xff] }
 0x1b1   : > { %v727_v52 = vpop.f32.mrb[4].mxu1  ;;  %v1559_v44 = vpack.c.bf16 %v857_v41, %v856_v39  ;;  %v1531_v49 = vpack.c.bf16 %v843_v47, %v842_v46  ;;  %v852_v39 = vld [vmem:[#allocation5 + $0xf0] sm:$0xff] }
 0x1b2   : > { %v643_v53 = vadd.f32 %v1302_v50, %v1255_v42  ;;  %v1303_v54 = vpop.f32.mrb[4].mxu0  ;;  %v1425_v55 = vpop.f32.mrb[5].mxu1  ;;  %v731_v56 = vmax.f32 %v718_v51, 0.0  ;;  %v859_v50 = vld [vmem:[#allocation5 + $0x128] sm:$0xff]  ;;  %v826_v51 = vld [vmem:[#allocation5 + $0x20] sm:$0xff]  ;;  %v868_v41 = vld [vmem:[#allocation5 + $0x170] sm:$0xff] }
 0x1b3   : > { %v1304_v57 = vpop.f32.mrb[5].mxu0  ;;  %1560 = vmatpush3.bf16.msra.mxu1 %v1559_v44  ;;  %v844_v55 = vld [vmem:[#allocation5 + $0xb0] sm:$0xff] }
 0x1b4   : > { %v1305_v58 = vadd.f32 %v1304_v57, %v1303_v54  ;;  %734 = vadd.xlane.f32.xlu1 %v731_v56  ;;  %v723_v59 = vadd.f32 %v722_v45, %v643_v53  ;;  %1561 = vmatprep.subr.bf16.mxu1 %v1706_v2  ;;  %v1562_v53 = vpack.c.bf16 %v859_v50, %v858_v48  ;;  %v860_v57 = vld [vmem:[#allocation5 + $0x130] sm:$0xff] }
 0x1b5   : > { %v836_v44 = vld [vmem:[#allocation5 + $0x70] sm:$0xff] }
 0x1b6   : > { %v648_v60 = vadd.f32 %v1305_v58, %v1255_v42  ;;  %v732_v61 = vmax.f32 %v723_v59, 0.0  ;;  %v824_v42 = vld [vmem:[#allocation5 + $0x10] sm:$0xff]  ;;  %v861_v59 = vld [vmem:[#allocation5 + $0x138] sm:$0xff] }
 0x1b7   : > { %v1529_v45 = vpack.c.bf16 %v825_v43, %v824_v42  ;;  %1563 = vmatpush3.bf16.msra.mxu1 %v1562_v53  ;;  %v1551_v42 = vpack.c.bf16 %v853_v40, %v852_v39  ;;  %v869_v43 = vld [vmem:[#allocation5 + $0x178] sm:$0xff] }
 0x1b8   : > { %736 = vadd.xlane.f32.xlu0 %v732_v61  ;;  %v728_v62 = vadd.f32 %v727_v52, %v648_v60  ;;  %v827_v52 = vld [vmem:[#allocation5 + $0x28] sm:$0xff]  ;;  %1564 = vmatprep.subr.bf16.mxu1 %v1706_v2  ;;  %v828_v60 = vld [vmem:[#allocation5 + $0x30] sm:$0xff]  ;;  %v1577_v46 = vpack.c.bf16 %v869_v43, %v868_v41 }
 0x1b9   : > { %1530 = vmatpush3.bf16.msra.mxu0 %v1529_v45  ;;  %v1533_v54 = vpack.c.bf16 %v827_v52, %v826_v51  ;;  %v837_v45 = vld [vmem:[#allocation5 + $0x78] sm:$0xff] }
 0x1ba   : > { %v733_v63 = vmax.f32 %v728_v62, 0.0  ;;  %1532 = vmatprep.subr.bf16.mxu0 %v1531_v49  ;;  %v1565_v62 = vpack.c.bf16 %v861_v59, %v860_v57  ;;  %v1553_v47 = vpack.c.bf16 %v837_v45, %v836_v44  ;;  %v1256_v57 = vld [vmem:[%s2001_s4] ss:$0 sm:$0xff] }
 0x1bb   : > { %v1257_v59 = vld [vmem:[%s2002_s5] ss:$0 sm:$0xff] }
 0x1bc   : > { %v738_v0 = vsel %vm507_vm2, %v733_v63, 0.0  ;;  %1566 = vmatpush3.bf16.msra.mxu1 %v1565_v62 }
 0x1bd   : > { %739 = vadd.xlane.f32.xlu0 %v738_v0  ;;  %1534 = vmatpush3.bf16.msra.mxu0 %v1533_v54  ;;  %v846_v0 = vld [vmem:[#allocation5 + $0xc0] sm:$0xff] }
 0x1be   : > { %1567 = vmatprep.subr.bf16.mxu1 %v1706_v2  ;;  %v1539_v7 = vpack.c.bf16 %v847_v1, %v846_v0 }
 0x1c0   : > { %1569 = vmatpush3.bf16.msra.mxu1 %v1568_v11 }
 0x1c1   : > { %1570 = vmatprep.subr.bf16.mxu1 %v1706_v2 }
 0x241   : > { %v735_v13 = vpop.xlane.xlu1 %734 }
 0x242   : > { %v741_v14 = vmul.f32 0.03125, %v735_v13  ;;  %v848_v13 = vld [vmem:[#allocation5 + $0xd0] sm:$0xff] }
 0x244   : > { %v744_v16 = vsub.f32 %v731_v56, %v741_v14  ;;  %v845_v56 = vld [vmem:[#allocation5 + $0xb8] sm:$0xff] }
 0x245   : > { %v737_v17 = vpop.xlane.xlu0 %736  ;;  %v1535_v58 = vpack.c.bf16 %v845_v56, %v844_v55  ;;  %v849_v14 = vld [vmem:[#allocation5 + $0xd8] sm:$0xff] }
 0x246   : > { %v742_v18 = vmul.f32 0.03125, %v737_v17  ;;  %v1919_v19 = vmul.f32 %v1916_v15, %v744_v16  ;;  %v864_v16 = vld [vmem:[#allocation5 + $0x150] sm:$0xff]  ;;  %v1543_v17 = vpack.c.bf16 %v849_v14, %v848_v13 }
 0x247   : > { %1536 = vmatprep.subr.bf16.mxu0 %v1535_v58 }
 0x248   : > { %v745_v22 = vsub.f32 %v732_v61, %v742_v18  ;;  %v750_v23 = vmul.f32 %v1919_v19, %v1919_v19  ;;  %v829_v61 = vld [vmem:[#allocation5 + $0x38] sm:$0xff] }
 0x249   : > { %v865_v18 = vld [vmem:[#allocation5 + $0x158] sm:$0xff] }
 0x24a   : > { %v740_v24 = vpop.xlane.xlu0 %739  ;;  %753 = vadd.xlane.f32.xlu1 %v750_v23  ;;  %v1924_v25 = vmul.f32 %v1916_v15, %v745_v22  ;;  %v832_v22 = vld [vmem:[#allocation5 + $0x50] sm:$0xff]  ;;  %v833_v23 = vld [vmem:[#allocation5 + $0x58] sm:$0xff] }
 0x24b   : > { %v743_v27 = vmul.f32 0.03125, %v740_v24  ;;  %v1571_v24 = vpack.c.bf16 %v865_v18, %v864_v16 }
 0x24c   : > { %v751_v28 = vmul.f32 %v1924_v25, %v1924_v25 }
 0x24d   : > { %v746_v29 = vsub.f32 %v733_v63, %v743_v27  ;;  %v1537_v63 = vpack.c.bf16 %v829_v61, %v828_v60  ;;  %v1545_v27 = vpack.c.bf16 %v833_v23, %v832_v22  ;;  %1572 = vmatpush3.bf16.msra.mxu1 %v1571_v24  ;;  %v793_v60 = vrot.slane %v1897_v26, 1 }
 0x24e   : > { %755 = vadd.xlane.f32.xlu0 %v751_v28  ;;  %v850_v28 = vld [vmem:[#allocation5 + $0xe0] sm:$0xff]  ;;  %1573 = vmatprep.subr.bf16.mxu1 %v1706_v2 }
 0x24f   : > { %v1929_v30 = vmul.f32 %v1916_v15, %v746_v29  ;;  %1538 = vmatpush3.bf16.msra.mxu0 %v1537_v63  ;;  %v851_v29 = vld [vmem:[#allocation5 + $0xe8] sm:$0xff]  ;;  %v792_v63 = vrot.slane %v1891_v20, 1  ;;  %v796_v11 = vsel %vm498_vm1, %v793_v60, %v795_v6 }
 0x250   : > { %1540 = vmatprep.subr.bf16.mxu0 %v1539_v7 }
 0x251   : > { %v752_v31 = vmul.f32 %v1929_v30, %v1929_v30  ;;  %v794_v7 = vsel %vm498_vm1, %v792_v63, %v793_v60 }
 0x253   : > { %v757_v32 = vsel %vm507_vm2, %v752_v31, 0.0  ;;  %1542 = vmatpush3.bf16.msra.mxu0 %v1541_v12  ;;  %v866_v31 = vld [vmem:[#allocation5 + $0x160] sm:$0xff] }
 0x254   : > { %758 = vadd.xlane.f32.xlu1 %v757_v32  ;;  %1544 = vmatprep.subr.bf16.mxu0 %v1543_v17  ;;  %v1547_v32 = vpack.c.bf16 %v851_v29, %v850_v28  ;;  %v1574_v37 = vpack.c.bf16 %v867_v34, %v866_v31 }
 0x256   : > { %1575 = vmatpush3.bf16.msra.mxu1 %v1574_v37 }
 0x257   : > { %1546 = vmatpush3.bf16.msra.mxu0 %v1545_v27  ;;  %1576 = vmatprep.subr.bf16.mxu1 %v1706_v2 }
 0x258   : > { %1548 = vmatprep.subr.bf16.mxu0 %v1547_v32 }
 0x25a   : > { %1578 = vmatpush3.bf16.msra.mxu1 %v1577_v46 }
 0x25b   : > { %1550 = vmatpush3.bf16.msra.mxu0 %v1549_v38 }
 0x25c   : > { %1552 = vmatprep.subr.bf16.mxu0 %v1551_v42 }
 0x25f   : > { %1554 = vmatpush3.bf16.msra.mxu0 %v1553_v47 }
 0x2d7   : > { %v754_v48 = vpop.xlane.xlu1 %753 }
 0x2d8   : > { %v760_v49 = vmul.f32 0.03125, %v754_v48 }
 0x2da   : > { %v763_v50 = vadd.f32 1e-05, %v760_v49 }
 0x2db   : > { %v756_v51 = vpop.xlane.xlu0 %755 }
 0x2dc   : > { %1617 = vrsqrt.f32 %v763_v50  ;;  %v761_v52 = vmul.f32 0.03125, %v756_v51 }
 0x2de   : > { %v764_v53 = vadd.f32 1e-05, %v761_v52 }
 0x2e0   : > { %1619 = vrsqrt.f32 %v764_v53 }
 0x2e1   : > { %v759_v54 = vpop.xlane.xlu1 %758 }
 0x2e2   : > { %v762_v55 = vmul.f32 0.03125, %v759_v54 }
 0x2e4   : > { %v765_v2 = vadd.f32 1e-05, %v762_v55 }
 0x2e6   : > { %v1618_v56 = vpop.eup %1617  ;;  %1621 = vrsqrt.f32 %v765_v2 }
 0x2e7   : > { %v769_v58 = vmul.f32 %v1618_v56, %v1919_v19 }
 0x2e9   : > { %v779_v61 = vmul.f32 %v1256_v57, %v769_v58 }
 0x2ea   : > { %v1620_v62 = vpop.eup %1619 }
 0x2eb   : > { %v770_v0 = vmul.f32 %v1620_v62, %v1924_v25  ;;  %v789_v1 = vadd.f32 %v1257_v59, %v779_v61 }
 0x2ed   : > { %v780_v8 = vmul.f32 %v1256_v57, %v770_v0  ;;  %v800_v9 = vmul.f32 %v794_v7, %v789_v1 }
 0x2ef   : > { %v790_v19 = vadd.f32 %v1257_v59, %v780_v8  ;;  %v806_v14 = vrot.slane %v800_v9, 1  ;;  %v814_v18 = vrot.slane %v800_v9, 2 }
 0x2f0   : > { %v1622_v10 = vpop.eup %1621 }
 0x2f1   : > { %v771_v12 = vmul.f32 %v1622_v10, %v1929_v30  ;;  %v801_v13 = vmul.f32 %v796_v11, %v790_v19 }
 0x2f3   : > { %v781_v16 = vmul.f32 %v1256_v57, %v771_v12  ;;  %v807_v17 = vrot.slane %v801_v13, 1  ;;  %v815_v22 = vrot.slane %v801_v13, 2  ;;  %v1137_v12 = vrot.slane %v1868_v3, 2 }
 0x2f4   : > { %v1100_v3 = vrot.slane %v1897_v26, 2 }
 0x2f5   : > { %v808_v25 = vsel %vm498_vm1, %v806_v14, %v807_v17  ;;  %v816_v23 = vsel %vm507_vm2, %v814_v18, %v815_v22  ;;  %v791_v24 = vadd.f32 %v1257_v59, %v781_v16 }
 0x2f6   : > { %941 = vmatprep.mubr.f32.mxu0 %v808_v25  ;;  %1459 = vmatmul.mubr.f32.vlgmr.msra.gmra.mrb[6].mxu1 %v816_v23 }
 0x2f7   : > { %942 = vmatmul.mubr.f32.vlgmr.msra.gmra.mrb[6].mxu0 %v800_v9  ;;  %1461 = vmatprep.mubr.msk.f32.mxu1 %vm1707_vm0, %v1708_v33  ;;  %v802_v27 = vmul.f32 %v795_v6, %v791_v24 }
 0x2f9   : > { %v809_v28 = vrot.slane %v802_v27, 1  ;;  %v817_v30 = vrot.slane %v802_v27, 2 }
 0x2fb   : > { %v810_v29 = vsel %vm498_vm1, %v807_v17, %v809_v28  ;;  %v818_v31 = vsel %vm507_vm2, %v815_v22, %v817_v30 }
 0x2fc   : > { %946 = vmatprep.mubr.f32.mxu0 %v810_v29  ;;  %1462 = vmatmul.mubr.f32.gmra.mrb[8].mxu1 %v818_v31  ;;  %v1099_v31 = vrot.slane %v1891_v20, 2 }
 0x2fd   : > { %947 = vmatmul.mubr.f32.gmra.mrb[8].mxu0 %v801_v13  ;;  %1464 = vmatprep.mubr.msk.f32.mxu1 %vm1707_vm0, %v1708_v33  ;;  %v1138_v13 = vrot.slane %v1872_v5, 2 }
 0x2fe   : > { %951 = vmatprep.mubr.f32.mxu0 %v809_v28 }
 0x2ff   : > { %v1139_v14 = vsel %vm507_vm2, %v1137_v12, %v1138_v13 }
 0x300   : > { %1465 = vmatmul.mubr.f32.gmra.mrb[10].mxu1 %v817_v30  ;;  %v1260_v30 = vld [vmem:[%s2006_s9] ss:$0 sm:$0xff] }
 0x301   : > { %952 = vmatmul.mubr.f32.gmra.mrb[10].mxu0 %v802_v27 }
 0x3c9   : > { %v1023_v32 = vpop.f32.mrb[6].mxu1 }
 0x3ca   : > { %v1357_v34 = vpop.f32.mrb[6].mxu0  ;;  %v1460_v35 = vpop.f32.mrb[7].mxu1 }
 0x3cb   : > { %v1358_v37 = vpop.f32.mrb[7].mxu0  ;;  %v1101_v35 = vsel %vm507_vm2, %v1099_v31, %v1100_v3 }
 0x3cc   : > { %v1359_v38 = vadd.f32 %v1358_v37, %v1357_v34 }
 0x3ce   : > { %v944_v39 = vadd.f32 %v1359_v38, %v1258_v36 }
 0x3cf   : > { %v1028_v40 = vpop.f32.mrb[8].mxu1 }
 0x3d0   : > { %v1360_v41 = vpop.f32.mrb[8].mxu0  ;;  %v1463_v42 = vpop.f32.mrb[9].mxu1  ;;  %v1024_v43 = vadd.f32 %v1023_v32, %v944_v39 }
 0x3d1   : > { %v1361_v44 = vpop.f32.mrb[9].mxu0  ;;  %v1102_v42 = vrot.slane %v1893_v21, 2  ;;  %v1262_v21 = vld [vmem:[#allocation2] ss:$0 sm:$0xff] }
 0x3d2   : > { %v1362_v45 = vadd.f32 %v1361_v44, %v1360_v41  ;;  %v1037_v33 = vmax.f32 %v1024_v43, 0.0 }
 0x3d3   : > { %v1033_v46 = vpop.f32.mrb[10].mxu1 }
 0x3d4   : > { %v949_v47 = vadd.f32 %v1362_v45, %v1258_v36  ;;  %1040 = vadd.xlane.f32.xlu1 %v1037_v33  ;;  %v1363_v48 = vpop.f32.mrb[10].mxu0  ;;  %v1466_v49 = vpop.f32.mrb[11].mxu1 }
 0x3d5   : > { %v1364_v50 = vpop.f32.mrb[11].mxu0 }
 0x3d6   : > { %v1365_v51 = vadd.f32 %v1364_v50, %v1363_v48  ;;  %v1029_v52 = vadd.f32 %v1028_v40, %v949_v47  ;;  %v1103_v47 = vsel %vm507_vm2, %v1100_v3, %v1102_v42 }
 0x3d8   : > { %v954_v53 = vadd.f32 %v1365_v51, %v1258_v36  ;;  %v1038_v56 = vmax.f32 %v1029_v52, 0.0  ;;  %v1261_v36 = vld [vmem:[%s2007_s10] ss:$0 sm:$0xff]  ;;  %v1140_v51 = vrot.slane %v1870_v4, 2 }
 0x3da   : > { %v1034_v54 = vadd.f32 %v1033_v46, %v954_v53  ;;  %v1141_v52 = vsel %vm507_vm2, %v1138_v13, %v1140_v51 }
 0x3dc   : > { %v1039_v55 = vmax.f32 %v1034_v54, 0.0 }
 0x3de   : > { %v1045_v2 = vsel %vm1044_vm4, %v1039_v55, 0.0 }
 0x3df   : > { %1046 = vadd.xlane.f32.xlu0 %v1045_v2 }
 0x3e3   : > { %1042 = vadd.xlane.f32.xlu0 %v1038_v56 }
 0x461   : > { %v1041_v57 = vpop.xlane.xlu1 %1040 }
 0x462   : > { %v1048_v58 = vmul.f32 0.03125, %v1041_v57 }
 0x464   : > { %v1051_v59 = vsub.f32 %v1037_v33, %v1048_v58 }
 0x466   : > { %v1054_v60 = vmul.f32 %v1916_v15, %v1051_v59 }
 0x468   : > { %v1057_v61 = vmul.f32 %v1054_v60, %v1054_v60 }
 0x46a   : > { %1060 = vadd.xlane.f32.xlu0 %v1057_v61 }
 0x46c   : > { %v1047_v62 = vpop.xlane.xlu0 %1046 }
 0x46d   : > { %v1050_v63 = vmul.f32 0.03125, %v1047_v62 }
 0x46f   : > { %v1053_v0 = vsub.f32 %v1039_v55, %v1050_v63 }
 0x470   : > { %v1043_v1 = vpop.xlane.xlu0 %1042 }
 0x471   : > { %v1049_v6 = vmul.f32 0.03125, %v1043_v1  ;;  %v1056_v7 = vmul.f32 %v1916_v15, %v1053_v0 }
 0x473   : > { %v1052_v8 = vsub.f32 %v1038_v56, %v1049_v6  ;;  %v1059_v9 = vmul.f32 %v1056_v7, %v1056_v7 }
 0x475   : > { %v1064_v19 = vsel %vm1044_vm4, %v1059_v9, 0.0  ;;  %v1055_v10 = vmul.f32 %v1916_v15, %v1052_v8  ;;  %v1259_v15 = vld [vmem:[%s2005_s8] ss:$0 sm:$0xff] }
 0x476   : > { %1065 = vadd.xlane.f32.xlu1 %v1064_v19 }
 0x477   : > { %v1058_v11 = vmul.f32 %v1055_v10, %v1055_v10 }
 0x47a   : > { %1062 = vadd.xlane.f32.xlu1 %v1058_v11 }
 0x4f7   : > { %v1061_v16 = vpop.xlane.xlu0 %1060 }
 0x4f8   : > { %v1067_v17 = vmul.f32 0.03125, %v1061_v16 }
 0x4fa   : > { %v1070_v18 = vadd.f32 1e-05, %v1067_v17 }
 0x4fc   : > { %1623 = vrsqrt.f32 %v1070_v18 }
 0x503   : > { %v1066_v22 = vpop.xlane.xlu1 %1065 }
 0x504   : > { %v1069_v25 = vmul.f32 0.03125, %v1066_v22 }
 0x506   : > { %v1624_v23 = vpop.eup %1623  ;;  %v1072_v24 = vadd.f32 1e-05, %v1069_v25 }
 0x507   : > { %v1063_v27 = vpop.xlane.xlu1 %1062  ;;  %v1076_v28 = vmul.f32 %v1624_v23, %v1054_v60 }
 0x508   : > { %1625 = vrsqrt.f32 %v1072_v24  ;;  %v1068_v5 = vmul.f32 0.03125, %v1063_v27 }
 0x509   : > { %v1086_v29 = vmul.f32 %v1259_v15, %v1076_v28 }
 0x50a   : > { %v1071_v32 = vadd.f32 1e-05, %v1068_v5 }
 0x50b   : > { %v1096_v34 = vadd.f32 %v1260_v30, %v1086_v29 }
 0x50c   : > { %1627 = vrsqrt.f32 %v1071_v32 }
 0x50d   : > { %v1107_v37 = vmul.f32 %v1101_v35, %v1096_v34 }
 0x50f   : > { %v1117_v26 = vmul.f32 %v1261_v36, %v1107_v37 }
 0x511   : > { %1120 = vadd.xlane.f32.xlu0 %v1117_v26 }
 0x512   : > { %v1626_v38 = vpop.eup %1625 }
 0x513   : > { %v1078_v39 = vmul.f32 %v1626_v38, %v1056_v7 }
 0x515   : > { %v1088_v40 = vmul.f32 %v1259_v15, %v1078_v39 }
 0x516   : > { %v1628_v41 = vpop.eup %1627 }
 0x517   : > { %v1098_v43 = vadd.f32 %v1260_v30, %v1088_v40  ;;  %v1077_v20 = vmul.f32 %v1628_v41, %v1055_v10 }
 0x519   : > { %v1109_v44 = vmul.f32 %v1102_v42, %v1098_v43  ;;  %v1087_v45 = vmul.f32 %v1259_v15, %v1077_v20 }
 0x51b   : > { %v1119_v33 = vmul.f32 %v1261_v36, %v1109_v44  ;;  %v1097_v46 = vadd.f32 %v1260_v30, %v1087_v45 }
 0x51d   : > { %v1124_v48 = vsel %vm1044_vm4, %v1119_v33, 0.0  ;;  %v1108_v49 = vmul.f32 %v1103_v47, %v1097_v46 }
 0x51e   : > { %1125 = vadd.xlane.f32.xlu0 %v1124_v48 }
 0x51f   : > { %v1118_v50 = vmul.f32 %v1261_v36, %v1108_v49 }
 0x521   : > { %1122 = vadd.xlane.f32.xlu1 %v1118_v50 }
 0x59e   : > { %v1121_v53 = vpop.xlane.xlu0 %1120 }
 0x59f   : > { %v1134_v54 = vadd.f32 %v1262_v21, %v1121_v53 }
 0x5a1   : > { %v1145_v55 = vmul.f32 %v1139_v14, %v1134_v54 }
 0x5a3   : > { %1149 = vst.msk [vmem:[%s465_s22] sm:$0xff] %vm1148_vm5, %v1145_v55 }
 0x5ab   : > { %v1126_v2 = vpop.xlane.xlu0 %1125 }
 0x5ac   : > { %v1136_v56 = vadd.f32 %v1262_v21, %v1126_v2 }
 0x5ae   : > { %v1147_v57 = vmul.f32 %v1140_v51, %v1136_v56  ;;  %v1123_v58 = vpop.xlane.xlu1 %1122 }
 0x5af   : > { %v1135_v59 = vadd.f32 %v1262_v21, %v1123_v58 }
 0x5b0   : > { %1152 = vst.msk [vmem:[%s465_s22 + $0x10] sm:$0xf] %vm1151_vm6, %v1147_v57 }
 0x5b1   : > { %v1146_v4 = vmul.f32 %v1141_v52, %v1135_v59 }
 0x5b3   : > { %1150 = vst.msk [vmem:[%s465_s22 + $0x8] sm:$0xff] %vm1148_vm5, %v1146_v4 }
 0x5b4 PF: > { %s26_s23 = sadd.s32 1, %s1699_s23  }
 0x5b5   : > { %p23_p5 = scmp.ge.s32.totalorder %s26_s23, 4  }
 0x5b7   :  { %25 = sbr.rel (!%p23_p5) target bundleno = 5 (0x5), region = 110 }
 0x5be   :  { %1174 = vsyncpa [#allocation4], 1 }
 0x5bf   :  { %1176 = vsyncpa [#allocation4 + $0x1], 1 }
 0x5c0   :  { %1177 = vsyncpa [#allocation6], 1 }

</bundles_post_ra>
